<compile_context>
chip_gen: v7x
topology: tpu7x:2x2x1
jax: 0.10.0
libtpu: 0.0.40
codegen_flags: <defaults>
</compile_context>

<pallas_src>
import functools
import math

import jax
import jax.numpy as jnp
from jax.experimental import pallas as pl
from jax.experimental.pallas import tpu as pltpu


def mlp_kernel(x_ref, w1_ref, b1_ref, w2_ref, b2_ref, o_ref):
    # Cast x on the VPU (no-op when dtypes already match); avoids a separate
    # XLA cast pass over x in HBM when compute_dtype=bf16.
    xv = x_ref[...].astype(w1_ref.dtype)
    # layer1: MXU matmul, f32 accumulation + bias (VPU) + tanh (EUP, f32).
    h = jnp.dot(xv, w1_ref[...], preferred_element_type=jnp.float32)
    h = jnp.tanh(h + b1_ref[...])
    # layer2
    h = h.astype(w2_ref.dtype)
    y = jnp.dot(h, w2_ref[...], preferred_element_type=jnp.float32)
    o_ref[...] = (y + b2_ref[...]).astype(o_ref.dtype)


def _choose_fold(in_sz, hid_sz, out_sz, batch):
    """Batch rows folded per 128-lane group (block-diag weights). 1 = none."""
    if out_sz % 128 == 0:
        return 1                                  # already lane-dense
    fold = 128 // math.gcd(128, out_sz)           # fold*OUT is a mult. of 128
    if fold <= 1 or batch % fold != 0:
        return 1
    if fold * max(in_sz, hid_sz, out_sz) > 2048:
        return 1                                  # keep folded weights small
    return fold


@functools.partial(jax.jit, static_argnames=("batch_tile", "compute_dtype"))
def improved_network_forward(x, w1, b1, w2, b2, *, batch_tile=8192,
                             compute_dtype=None):
    """Fused forward: tanh(x @ w1 + b1) @ w2 + b2 (weights stored transposed
    vs. PyTorch: w1=(IN,HID), w2=(HID,OUT))."""
    B, IN = x.shape
    HID = w1.shape[1]
    OUT = w2.shape[1]
    out_dtype = x.dtype

    fold = _choose_fold(IN, HID, OUT, B)
    if fold > 1:
        # Byte-identical HBM reshapes + block-diagonal weights -> lane-dense.
        w1c = jnp.kron(jnp.eye(fold, dtype=w1.dtype), w1)   # (fold*IN, fold*HID)
        w2c = jnp.kron(jnp.eye(fold, dtype=w2.dtype), w2)   # (fold*HID, fold*OUT)
        b1c = jnp.tile(b1, fold)
        b2c = jnp.tile(b2, fold)
        xc = x.reshape(B // fold, fold * IN)
    else:
        w1c, b1c, w2c, b2c, xc = w1, b1, w2, b2, x

    rows, in_f = xc.shape
    hid_f = w1c.shape[1]
    out_f = w2c.shape[1]

    b1_2d = b1c.reshape(1, hid_f).astype(jnp.float32)
    b2_2d = b2c.reshape(1, out_f).astype(jnp.float32)
    if compute_dtype is not None:
        # Only the tiny, VMEM-pinned weights are pre-cast in the wrapper.
        w1c = w1c.astype(compute_dtype)
        w2c = w2c.astype(compute_dtype)

    # Enough for 8K-row f32 tiles even with 128-lane padding; within every
    # generation's physical VMEM (v5e/v6e 128 MiB, v7x 64 MiB).
    vmem_limit = 32 * 1024 * 1024

    single_shot_rows = min(batch_tile, 4096)
    if B <= single_shot_rows:
        # Grid-free: whole arrays resident in VMEM, zero grid-step overhead.
        y = pl.pallas_call(
            mlp_kernel,
            out_shape=jax.ShapeDtypeStruct((rows, out_f), out_dtype),
            in_specs=[pl.BlockSpec(memory_space=pltpu.MemorySpace.VMEM)] * 5,
            out_specs=pl.BlockSpec(memory_space=pltpu.MemorySpace.VMEM),
            compiler_params=pltpu.CompilerParams(vmem_limit_bytes=vmem_limit),
        )(xc, w1c, b1_2d, w2c, b2_2d)
    else:
        # Tiled over (folded) batch rows; ragged last block handled by Pallas
        # (no jnp.pad / out[:B] extra HBM passes).
        tile_rows = min(max(8, (batch_tile // fold) // 8 * 8), rows)
        y = pl.pallas_call(
            mlp_kernel,
            out_shape=jax.ShapeDtypeStruct((rows, out_f), out_dtype),
            grid=(pl.cdiv(rows, tile_rows),),
            in_specs=[
                pl.BlockSpec((tile_rows, in_f), lambda i: (i, 0)),
                # Weights/biases: constant index_map -> VMEM-resident.
                pl.BlockSpec((in_f, hid_f), lambda i: (0, 0)),
                pl.BlockSpec((1, hid_f), lambda i: (0, 0)),
                pl.BlockSpec((hid_f, out_f), lambda i: (0, 0)),
                pl.BlockSpec((1, out_f), lambda i: (0, 0)),
            ],
            out_specs=pl.BlockSpec((tile_rows, out_f), lambda i: (i, 0)),
            compiler_params=pltpu.CompilerParams(
                dimension_semantics=("parallel",),   # dual-TC split on v7x
                vmem_limit_bytes=vmem_limit),
        )(xc, w1c, b1_2d, w2c, b2_2d)

    return y.reshape(B, OUT) if fold > 1 else y


def reference_forward(x, w1, b1, w2, b2):
    h = jnp.tanh(x @ w1 + b1)
    return h @ w2 + b2


if __name__ == "__main__":
    # Sizes implied by the module: input_size -> hidden_size -> output_size.
    B, IN, HID, OUT = 8, 16, 32, 8

    key = jax.random.PRNGKey(0)
    kx, kw1, kb1, kw2, kb2, kx2, kx3 = jax.random.split(key, 7)

    # PyTorch-style uniform(-1/sqrt(fan_in), 1/sqrt(fan_in)) init.
    lim1 = 1.0 / jnp.sqrt(IN)
    lim2 = 1.0 / jnp.sqrt(HID)
    x = jax.random.normal(kx, (B, IN), dtype=jnp.float32)
    w1 = jax.random.uniform(kw1, (IN, HID), minval=-lim1, maxval=lim1,
                            dtype=jnp.float32)
    b1 = jax.random.uniform(kb1, (HID,), minval=-lim1, maxval=lim1,
                            dtype=jnp.float32)
    w2 = jax.random.uniform(kw2, (HID, OUT), minval=-lim2, maxval=lim2,
                            dtype=jnp.float32)
    b2 = jax.random.uniform(kb2, (OUT,), minval=-lim2, maxval=lim2,
                            dtype=jnp.float32)

    # 1) tiny batch: grid-free, unfolded fallback (B not a multiple of fold).
    out = jax.block_until_ready(improved_network_forward(x, w1, b1, w2, b2))
    ref = reference_forward(x, w1, b1, w2, b2)
    assert out.shape == (B, OUT)
    assert jnp.allclose(out, ref, atol=1e-5, rtol=1e-5), "small-batch mismatch"

    # 2) mid batch: grid-free + lane-dense folded layout.
    x2 = jax.random.normal(kx2, (4096, IN), dtype=jnp.float32)
    out2 = jax.block_until_ready(improved_network_forward(x2, w1, b1, w2, b2))
    ref2 = reference_forward(x2, w1, b1, w2, b2)
    assert out2.shape == (4096, OUT)
    assert jnp.allclose(out2, ref2, atol=1e-5, rtol=1e-5), "folded gridfree mismatch"

    # 3) large batch: tiled + folded + ragged last block (no jnp.pad/out[:B]).
    x3 = jax.random.normal(kx3, (20000, IN), dtype=jnp.float32)
    out3 = jax.block_until_ready(improved_network_forward(x3, w1, b1, w2, b2))
    ref3 = reference_forward(x3, w1, b1, w2, b2)
    assert out3.shape == (20000, OUT)
    assert jnp.allclose(out3, ref3, atol=1e-5, rtol=1e-5), "folded tiled mismatch"

    # 4) tiled fallback (batch not a multiple of fold) with a ragged tail.
    x4 = x3[:1100]
    out4 = jax.block_until_ready(
        improved_network_forward(x4, w1, b1, w2, b2, batch_tile=512))
    ref4 = reference_forward(x4, w1, b1, w2, b2)
    assert out4.shape == (1100, OUT)
    assert jnp.allclose(out4, ref4, atol=1e-5, rtol=1e-5), "unfolded tiled mismatch"

    # 5) bf16 MXU path (f32 accumulation, f32 tanh; x cast in-kernel).
    out_bf = jax.block_until_ready(
        improved_network_forward(x3, w1, b1, w2, b2, compute_dtype=jnp.bfloat16))
    assert jnp.allclose(out_bf, ref3, atol=5e-2, rtol=5e-2), "bf16 mismatch"

    print("KERNEL_OK")
</pallas_src>

<mosaic_0001>
module attributes {stable_mosaic.version = 11 : i64} {
  func.func @mlp_kernel(%arg0: memref<8x16xf32, #tpu.memory_space<vmem>>, %arg1: memref<16x32xf32, #tpu.memory_space<vmem>>, %arg2: memref<1x32xf32, #tpu.memory_space<vmem>>, %arg3: memref<32x8xf32, #tpu.memory_space<vmem>>, %arg4: memref<1x8xf32, #tpu.memory_space<vmem>>, %arg5: memref<8x8xf32, #tpu.memory_space<vmem>>) attributes {dimension_semantics = [], scalar_prefetch = 0 : i64, scratch_operands = 0 : i64, tpu.core_type = #tpu.core_type<tc>} {
    %c0 = arith.constant 0 : index
    %c0_0 = arith.constant 0 : index
    %0 = vector.load %arg0[%c0, %c0_0] : memref<8x16xf32, #tpu.memory_space<vmem>>, vector<8x16xf32>
    %c0_1 = arith.constant 0 : index
    %c0_2 = arith.constant 0 : index
    %1 = vector.load %arg1[%c0_1, %c0_2] : memref<16x32xf32, #tpu.memory_space<vmem>>, vector<16x32xf32>
    %cst = arith.constant dense<0.000000e+00> : vector<8x32xf32>
    %2 = tpu.matmul %0, %1, %cst {dimension_numbers = #tpu.dot_dimension_numbers<[1], [0], [0], [1], [0, 0, 1, 1], [], []>} : vector<8x16xf32>, vector<16x32xf32>, vector<8x32xf32> -> vector<8x32xf32>
    %c0_3 = arith.constant 0 : index
    %c0_4 = arith.constant 0 : index
    %3 = vector.load %arg2[%c0_3, %c0_4] : memref<1x32xf32, #tpu.memory_space<vmem>>, vector<1x32xf32>
    %4 = vector.broadcast %3 : vector<1x32xf32> to vector<8x32xf32>
    %5 = arith.addf %2, %4 : vector<8x32xf32>
    %6 = math.tanh %5 : vector<8x32xf32>
    %c0_5 = arith.constant 0 : index
    %c0_6 = arith.constant 0 : index
    %7 = vector.load %arg3[%c0_5, %c0_6] : memref<32x8xf32, #tpu.memory_space<vmem>>, vector<32x8xf32>
    %cst_7 = arith.constant dense<0.000000e+00> : vector<8x8xf32>
    %8 = tpu.matmul %6, %7, %cst_7 {dimension_numbers = #tpu.dot_dimension_numbers<[1], [0], [0], [1], [0, 0, 1, 1], [], []>} : vector<8x32xf32>, vector<32x8xf32>, vector<8x8xf32> -> vector<8x8xf32>
    %c0_8 = arith.constant 0 : index
    %c0_9 = arith.constant 0 : index
    %9 = vector.load %arg4[%c0_8, %c0_9] : memref<1x8xf32, #tpu.memory_space<vmem>>, vector<1x8xf32>
    %10 = vector.broadcast %9 : vector<1x8xf32> to vector<8x8xf32>
    %11 = arith.addf %8, %10 : vector<8x8xf32>
    %c0_10 = arith.constant 0 : index
    %c0_11 = arith.constant 0 : index
    %12 = vector.load %arg5[%c0_10, %c0_11] : memref<8x8xf32, #tpu.memory_space<vmem>>, vector<8x8xf32>
    tpu.vector_store %arg5[%c0_10, %c0_11], %11 {strides = array<i32>} : memref<8x8xf32, #tpu.memory_space<vmem>>, vector<8x8xf32>,
    return
  }
}

</mosaic_0001>

<bundles_post_ra>
// kernel: improved_network_forward.1
= control target key start
LH: loop header
LB: loop body
LE: loop exit
PB: predicated region body
PF: predicated region fallthrough
CT: control target
= control target key end

     0   :  { %v276_v2 = vmov 0.0|0.0   ;;  %vm277_vm0 = vmmov 0   ;;  %v278_v4 = vmov 0.0   ;;  %s349_s0 = inlined_call_operand.vmem [shape: f32[8,16], index: 0, kind: input, shape index: {}]   ;;  %s350_s1 = inlined_call_operand.vmem [shape: f32[16,32], index: 1, kind: input, shape index: {}]   ;;  %s351_s2 = inlined_call_operand.vmem [shape: f32[1,32], index: 2, kind: input, shape index: {}]   ;;  %s352_s3 = inlined_call_operand.vmem [shape: f32[32,8], index: 3, kind: input, shape index: {}]   ;;  %s353_s4 = inlined_call_operand.vmem [shape: f32[1,8], index: 4, kind: input, shape index: {}]   ;;  %s354_s5 = inlined_call_operand.hbm [shape: f32[8,8], index: 5, kind: output, shape index: {}]  }
   0x1   :  { %v22_v0 = vld [vmem:[%s350_s1] sm:$0xff]  ;;  %v23_v1 = vld [vmem:[%s350_s1 + $0x8] sm:$0xff]  ;;  %237 = vmatprep.subr.bf16.mxu0 %v276_v2  ;;  %223 = vmatprep.mubr.msk.f32.mxu0 %vm277_vm0, %v278_v4 }
   0x2   :  { %v238_v3 = vpack.c.bf16 %v23_v1, %v22_v0 }
   0x3   :  { %10 = vsyncpa [#allocation3], 0  ;;  %240 = vmatprep.subr.bf16.mxu1 %v276_v2  ;;  %234 = vmatprep.mubr.msk.f32.mxu1 %vm277_vm0, %v278_v4  ;;  %v21_v5 = vld [vmem:[%s349_s0] sm:$0xff]  ;;  %vm31_vm1 = vcmask 130048   ;;  %v107_v7 = vld [vmem:[%s352_s3 + $0x8] sm:$0xff]  ;;  %vm117_vm2 = vcmask 261120  }
   0x4   :  { %239 = vmatpush3.bf16.msra.mxu0 %v238_v3  ;;  %v106_v6 = vld [vmem:[%s352_s3] sm:$0xff]  ;;  %v108_v8 = vld [vmem:[%s352_s3 + $0x10] sm:$0xff]  ;;  %v109_v10 = vld [vmem:[%s352_s3 + $0x18] sm:$0xff]  ;;  %s279_s3 = smov [#allocation2]   ;;  %vm191_vm3 = vcmask 64512  }
   0x5   :  { %v241_v9 = vpack.c.bf16 %v107_v7, %v106_v6  ;;  %v244_v11 = vpack.c.bf16 %v109_v10, %v108_v8  ;;  %v207_v12 = vld [vmem:[%s351_s2] ss:$0 sm:$0xff]  ;;  %s199_s9 = sshll.u32 %s279_s3, 4  ;;  %s200_s9 = int_to_ptr.vmem [resolvable:$true] %s199_s9 }
   0x6   :  { %v209_v17 = vld [vmem:[%s353_s4] ss:$0 sm:$0xff]  ;;  %s252_s2 = scalar_lea.vmem %s200_s9, 128  ;;  %p257_p1 = scmp.lt.s32.totalorder %s200_s9, %s200_s9 }
   0x7   :  { %224 = vmatmul.mubr.msk.f32.vlgmr.msra.gmra.mrb[0].mxu0 %vm31_vm1, %v21_v5  ;;  %242 = vmatpush3.bf16.msra.mxu1 %v241_v9  ;;  %p253_p0 = scmp.ne.s32.totalorder %s200_s9, %s252_s2  ;;  %p258_p2 = scmp.lt.s32.totalorder %s252_s2, %s252_s2 }
   0x8   :  { %243 = vmatprep.subr.bf16.mxu1 %v276_v2 }
   0x9   :  { %p259_p3 = por %p258_p2, %p257_p1 }
   0xb   :  { %245 = vmatpush3.bf16.msra.mxu1 %v244_v11  ;;  %p260_p4 = pnand %p259_p3, %p253_p0 }
  0xda   :  { %v101_v13 = vpop.f32.mrb[0].mxu0 }
  0xdb   :  { %v102_v14 = vadd.f32 %v207_v12, %v101_v13  ;;  %v225_v15 = vpop.f32.mrb[1].mxu0 }
  0xdd   :  { %250 = vtanh.f32 %v102_v14 }
  0xe7   :  { %v251_v16 = vpop.eup %250 }
  0xe8   :  { %235 = vmatmul.mubr.msk.f32.vlgmr.msra.gmra.mrb[0].mxu1 %vm117_vm2, %v251_v16 }
 0x1bb   :  { %v187_v18 = vpop.f32.mrb[0].mxu1 }
 0x1bc   :  { %v188_v19 = vadd.f32 %v209_v17, %v187_v18  ;;  %v236_v20 = vpop.f32.mrb[1].mxu1 }
 0x1be   :  { %192 = vst.msk [vmem:[#allocation2] sm:$0xff] %vm191_vm3, %v188_v19 }
 0x1bf   :  { %263 = shalt.err (!%p260_p4)
}
 0x1c0   :  { %s264_s12 = scalar_lea.hbm %s354_s5, 128 }
 0x1c1   :  { %p265_p5 = scmp.ne.s32.totalorder %s354_s5, %s264_s12  ;;  %p268_p6 = scmp.lt.u32.totalorder %s264_s12, %s354_s5 }
 0x1c3   :  { %p270_p7 = pnand %p268_p6, %p265_p5 }
 0x1c5   :  { %273 = shalt.err (!%p270_p7)
}
 0x1c6   :  { %202 = dma.vmem_to_hbm [thread:$0]  %s200_s9, 128, %s354_s5, [#allocation3]  }
 0x1c7   :  { %274 = dma.done.wait [#allocation3], 128  }
 0x1c8   :  { %275 = vsyncadd [#allocation3], 4294967168 }
 0x1c9   :  { %206 = vsyncpa [#allocation3], 1 }

</bundles_post_ra>
